<compile_context>
chip_gen: v6e
topology: v6e:2x2x1
jax: 0.10.0
libtpu: 0.0.40
codegen_flags: <defaults>
</compile_context>

<pallas_src>
import jax
import jax.numpy as jnp
from jax import lax
from jax.experimental import pallas as pl
from jax.experimental.pallas import tpu as pltpu

D = 32        # input feature dim
H1 = 128      # hidden 1
H2 = 64       # hidden 2
OUT = 1       # output dim
TB_MAX = 4096 # max batch tile (lane-dense; fits default scoped VMEM on v5e/v6e/v7x)

# dot_general dims: contract dim 1 of W1 (H1,D) with dim 1 of x (tb,D) -> (H1, tb)
_NT_DIMS = (((1,), (1,)), ((), ()))


def _sigmoid(z):
    # sigmoid(z) == 0.5 * tanh(0.5 * z) + 0.5  -- single EUP transcendental.
    return 0.5 * jnp.tanh(0.5 * z) + 0.5


def creepnet_kernel(x_ref, w1_ref, b1_ref, w2_ref, b2_ref, w3_ref, b3_ref, o_ref):
    # x_ref: (tb, D) block straight from HBM (batch on sublanes here only).
    # Layer 1: W1 @ x^T via NT dot_general -> (H1, tb); batch moves to lanes.
    x = x_ref[...].astype(w1_ref.dtype)               # in-VMEM cast (bf16 or no-op)
    z1 = lax.dot_general(w1_ref[...], x, _NT_DIMS,
                         preferred_element_type=jnp.float32) + b1_ref[...]
    h1 = _sigmoid(z1)                                  # (H1, tb) f32

    # Layer 2: (H2, H1) @ (H1, tb) -> (H2, tb); MXU at native weight dtype,
    # f32 accumulation.
    z2 = jnp.dot(w2_ref[...], h1.astype(w2_ref.dtype),
                 preferred_element_type=jnp.float32) + b2_ref[...]
    h2 = _sigmoid(z2)                                  # (H2, tb) f32

    # Layer 3 (out_features = 1): VPU broadcast-multiply + XLU sublane reduce.
    z3 = jnp.sum(h2 * w3_ref[...], axis=0, keepdims=True) + b3_ref[...]
    o_ref[...] = jnp.maximum(z3, 0.0)                  # ReLU, lane-dense (1, tb)


def _round_up(n, m):
    return ((n + m - 1) // m) * m


def _pick_tile(B):
    """Batch tile: big enough to amortize per-step overhead, capped so that
    when B is moderate we still get >=2 grid steps (v7x has 2 TensorCores)."""
    if B >= 2 * TB_MAX:
        return TB_MAX
    tb = max(128, _round_up(-(-B // 2), 128))          # ~ceil(B/2), lane-aligned
    return min(tb, TB_MAX)


def creepnet_forward(x, params, *, tb=None, compute_dtype=jnp.bfloat16):
    """x: (B, D). params in PyTorch nn.Linear (out_features, in_features) layout.
    Returns (B, 1) float32.  compute_dtype controls W1/W2/MXU-input dtype
    (accumulation is always f32); use jnp.float32 for a strict-accuracy policy."""
    w1, b1, w2, b2, w3, b3 = params
    B, Din = x.shape
    assert Din == D

    if tb is None:
        tb = _pick_tile(B)
    n_tiles = pl.cdiv(B, tb)

    # Weights stay in PyTorch (out, in) layout.  Matmul weights optionally bf16;
    # biases / tiny final weight kept f32 (added to / multiplied with f32 acc).
    w1c = w1.astype(compute_dtype)                     # (H1, D)
    w2c = w2.astype(compute_dtype)                     # (H2, H1)
    b1c = b1.reshape(H1, 1).astype(jnp.float32)
    b2c = b2.reshape(H2, 1).astype(jnp.float32)
    w3c = w3.reshape(OUT, H2).T.astype(jnp.float32)    # (H2, 1) column
    b3c = b3.reshape(1, 1).astype(jnp.float32)

    w_itemsize = jnp.dtype(compute_dtype).itemsize
    cost = pl.CostEstimate(
        flops=2 * B * (D * H1 + H1 * H2 + H2 * OUT),
        transcendentals=B * (H1 + H2),                 # one tanh per hidden unit
        bytes_accessed=(B * D * x.dtype.itemsize       # single pass over x
                        + B * OUT * 4                  # output write
                        + (H1 * D + H2 * H1) * w_itemsize
                        + (H1 + H2 + H2 + 1) * 4),
    )

    rep = lambda shape: pl.BlockSpec(shape, lambda i: (0, 0))  # grid-resident

    out2d = pl.pallas_call(
        creepnet_kernel,
        out_shape=jax.ShapeDtypeStruct((1, B), jnp.float32),   # lane-dense output
        grid_spec=pltpu.PrefetchScalarGridSpec(
            num_scalar_prefetch=0,
            grid=(n_tiles,),
            in_specs=[
                pl.BlockSpec((tb, D), lambda i: (i, 0)),       # x tile (no pad/transpose)
                rep((H1, D)),                                  # w1
                rep((H1, 1)),                                  # b1 (column)
                rep((H2, H1)),                                 # w2
                rep((H2, 1)),                                  # b2 (column)
                rep((H2, 1)),                                  # w3 (column)
                rep((1, 1)),                                   # b3
            ],
            out_specs=pl.BlockSpec((1, tb), lambda i: (0, i)),
        ),
        compiler_params=pltpu.CompilerParams(
            dimension_semantics=("parallel",),
        ),
        cost_estimate=cost,
    )(x, w1c, b1c, w2c, b2c, w3c, b3c)

    return out2d.reshape(B, OUT)


def init_params(key):
    # Deterministic synthetic parameters in PyTorch nn.Linear (out, in) layout.
    k1, k2, k3, k4, k5, k6 = jax.random.split(key, 6)
    w1 = jax.random.normal(k1, (H1, D), jnp.float32) * 0.1
    b1 = jax.random.normal(k2, (H1,), jnp.float32) * 0.1
    w2 = jax.random.normal(k3, (H2, H1), jnp.float32) * 0.1
    b2 = jax.random.normal(k4, (H2,), jnp.float32) * 0.1
    w3 = jax.random.normal(k5, (OUT, H2), jnp.float32) * 0.1
    b3 = jax.random.normal(k6, (OUT,), jnp.float32) * 0.1
    return (w1, b1, w2, b2, w3, b3)


def reference_forward(x, params):
    # Pure-JAX reference of the PyTorch forward pass (PyTorch weight layout).
    w1, b1, w2, b2, w3, b3 = params
    h = jax.nn.sigmoid(x @ w1.T + b1)
    h = jax.nn.sigmoid(h @ w2.T + b2)
    return jnp.maximum(h @ w3.T + b3, 0.0)


if __name__ == "__main__":
    key = jax.random.PRNGKey(0)
    kx, kp = jax.random.split(key)
    B = 300                      # exercises a 2-step grid + a ragged last block
    x = jax.random.normal(kx, (B, D), jnp.float32)
    params = init_params(kp)
    ref = reference_forward(x, params)

    # f32 weight path (strict numerical check; also the strict-accuracy policy).
    out_f32 = jax.block_until_ready(
        creepnet_forward(x, params, compute_dtype=jnp.float32))
    assert out_f32.shape == (B, OUT)
    assert jnp.allclose(out_f32, ref, atol=1e-4, rtol=1e-4), "f32 mismatch vs reference"

    # Default policy: bf16 weights / MXU inputs, f32 accumulation (v6e/v7x).
    out_bf16 = jax.block_until_ready(creepnet_forward(x, params))
    assert out_bf16.shape == (B, OUT)
    assert jnp.allclose(out_bf16, ref, atol=5e-2, rtol=5e-2), "bf16 mismatch vs reference"

    print("KERNEL_OK")
</pallas_src>

<mosaic_0001>
module attributes {stable_mosaic.version = 11 : i64} {
  func.func @creepnet_kernel(%arg0: i32, %arg1: memref<256x32xf32, #tpu.memory_space<vmem>>, %arg2: memref<128x32xf32, #tpu.memory_space<vmem>>, %arg3: memref<128x1xf32, #tpu.memory_space<vmem>>, %arg4: memref<64x128xf32, #tpu.memory_space<vmem>>, %arg5: memref<64x1xf32, #tpu.memory_space<vmem>>, %arg6: memref<64x1xf32, #tpu.memory_space<vmem>>, %arg7: memref<1x1xf32, #tpu.memory_space<vmem>>, %arg8: memref<1x256xf32, #tpu.memory_space<vmem>>) attributes {dimension_semantics = [#tpu.dimension_semantics<parallel>], iteration_bounds = array<i64: 2>, scalar_prefetch = 0 : i64, scratch_operands = 0 : i64, tpu.core_type = #tpu.core_type<tc>, window_params = [{transform_indices = @transform_0, window_bounds = array<i64: 256, 32>}, {pipeline_mode = #tpu.pipeline_mode<synchronous>, transform_indices = @transform_1, window_bounds = array<i64: 128, 32>}, {pipeline_mode = #tpu.pipeline_mode<synchronous>, transform_indices = @transform_2, window_bounds = array<i64: 128, 1>}, {pipeline_mode = #tpu.pipeline_mode<synchronous>, transform_indices = @transform_3, window_bounds = array<i64: 64, 128>}, {pipeline_mode = #tpu.pipeline_mode<synchronous>, transform_indices = @transform_4, window_bounds = array<i64: 64, 1>}, {pipeline_mode = #tpu.pipeline_mode<synchronous>, transform_indices = @transform_5, window_bounds = array<i64: 64, 1>}, {pipeline_mode = #tpu.pipeline_mode<synchronous>, transform_indices = @transform_6, window_bounds = array<i64: 1, 1>}, {transform_indices = @transform_7, window_bounds = array<i64: 1, 256>}]} {
    %c0 = arith.constant 0 : index
    %c0_0 = arith.constant 0 : index
    %0 = vector.load %arg1[%c0, %c0_0] : memref<256x32xf32, #tpu.memory_space<vmem>>, vector<256x32xf32>
    %c0_1 = arith.constant 0 : index
    %c0_2 = arith.constant 0 : index
    %1 = vector.load %arg2[%c0_1, %c0_2] : memref<128x32xf32, #tpu.memory_space<vmem>>, vector<128x32xf32>
    %cst = arith.constant dense<0.000000e+00> : vector<128x256xf32>
    %2 = tpu.matmul %1, %0, %cst {dimension_numbers = #tpu.dot_dimension_numbers<[1], [1], [0], [0], [0, 0, 1, 0], [], []>} : vector<128x32xf32>, vector<256x32xf32>, vector<128x256xf32> -> vector<128x256xf32>
    %c0_3 = arith.constant 0 : index
    %c0_4 = arith.constant 0 : index
    %3 = vector.load %arg3[%c0_3, %c0_4] : memref<128x1xf32, #tpu.memory_space<vmem>>, vector<128x1xf32>
    %4 = vector.broadcast %3 : vector<128x1xf32> to vector<128x256xf32>
    %5 = arith.addf %2, %4 : vector<128x256xf32>
    %cst_5 = arith.constant 5.000000e-01 : f32
    %6 = vector.broadcast %cst_5 : f32 to vector<128x256xf32>
    %7 = arith.mulf %6, %5 : vector<128x256xf32>
    %8 = math.tanh %7 : vector<128x256xf32>
    %cst_6 = arith.constant 5.000000e-01 : f32
    %9 = vector.broadcast %cst_6 : f32 to vector<128x256xf32>
    %10 = arith.mulf %9, %8 : vector<128x256xf32>
    %cst_7 = arith.constant 5.000000e-01 : f32
    %11 = vector.broadcast %cst_7 : f32 to vector<128x256xf32>
    %12 = arith.addf %10, %11 : vector<128x256xf32>
    %c0_8 = arith.constant 0 : index
    %c0_9 = arith.constant 0 : index
    %13 = vector.load %arg4[%c0_8, %c0_9] : memref<64x128xf32, #tpu.memory_space<vmem>>, vector<64x128xf32>
    %cst_10 = arith.constant dense<0.000000e+00> : vector<64x256xf32>
    %14 = tpu.matmul %13, %12, %cst_10 {dimension_numbers = #tpu.dot_dimension_numbers<[1], [0], [0], [1], [0, 0, 1, 1], [], []>} : vector<64x128xf32>, vector<128x256xf32>, vector<64x256xf32> -> vector<64x256xf32>
    %c0_11 = arith.constant 0 : index
    %c0_12 = arith.constant 0 : index
    %15 = vector.load %arg5[%c0_11, %c0_12] : memref<64x1xf32, #tpu.memory_space<vmem>>, vector<64x1xf32>
    %16 = vector.broadcast %15 : vector<64x1xf32> to vector<64x256xf32>
    %17 = arith.addf %14, %16 : vector<64x256xf32>
    %cst_13 = arith.constant 5.000000e-01 : f32
    %18 = vector.broadcast %cst_13 : f32 to vector<64x256xf32>
    %19 = arith.mulf %18, %17 : vector<64x256xf32>
    %20 = math.tanh %19 : vector<64x256xf32>
    %cst_14 = arith.constant 5.000000e-01 : f32
    %21 = vector.broadcast %cst_14 : f32 to vector<64x256xf32>
    %22 = arith.mulf %21, %20 : vector<64x256xf32>
    %cst_15 = arith.constant 5.000000e-01 : f32
    %23 = vector.broadcast %cst_15 : f32 to vector<64x256xf32>
    %24 = arith.addf %22, %23 : vector<64x256xf32>
    %c0_16 = arith.constant 0 : index
    %c0_17 = arith.constant 0 : index
    %25 = vector.load %arg6[%c0_16, %c0_17] : memref<64x1xf32, #tpu.memory_space<vmem>>, vector<64x1xf32>
    %26 = vector.broadcast %25 : vector<64x1xf32> to vector<64x256xf32>
    %27 = arith.mulf %24, %26 : vector<64x256xf32>
    %cst_18 = arith.constant dense<0.000000e+00> : vector<256xf32>
    %28 = vector.multi_reduction <add>, %27, %cst_18 [0] : vector<64x256xf32> to vector<256xf32>
    %29 = vector.shape_cast %28 : vector<256xf32> to vector<1x256xf32>
    %c0_19 = arith.constant 0 : index
    %c0_20 = arith.constant 0 : index
    %30 = vector.load %arg7[%c0_19, %c0_20] : memref<1x1xf32, #tpu.memory_space<vmem>>, vector<1x1xf32>
    %31 = vector.broadcast %30 : vector<1x1xf32> to vector<1x256xf32>
    %32 = arith.addf %29, %31 : vector<1x256xf32>
    %cst_21 = arith.constant 0.000000e+00 : f32
    %33 = vector.broadcast %cst_21 : f32 to vector<1x256xf32>
    %34 = arith.maximumf %32, %33 : vector<1x256xf32>
    %c0_22 = arith.constant 0 : index
    %c0_23 = arith.constant 0 : index
    %35 = vector.load %arg8[%c0_22, %c0_23] : memref<1x256xf32, #tpu.memory_space<vmem>>, vector<1x256xf32>
    tpu.vector_store %arg8[%c0_22, %c0_23], %34 {strides = array<i32>} : memref<1x256xf32, #tpu.memory_space<vmem>>, vector<1x256xf32>,
    return
  }
  func.func @transform_0(%arg0: i32) -> (i32, i32) {
    %c0_i32 = arith.constant 0 : i32
    %c0_i32_0 = arith.constant 0 : i32
    return %arg0, %c0_i32 : i32, i32
  }
  func.func @transform_1(%arg0: i32) -> (i32, i32) {
    %c0_i32 = arith.constant 0 : i32
    %c0_i32_0 = arith.constant 0 : i32
    %c0_i32_1 = arith.constant 0 : i32
    return %c0_i32, %c0_i32_0 : i32, i32
  }
  func.func @transform_2(%arg0: i32) -> (i32, i32) {
    %c0_i32 = arith.constant 0 : i32
    %c0_i32_0 = arith.constant 0 : i32
    %c0_i32_1 = arith.constant 0 : i32
    return %c0_i32, %c0_i32_0 : i32, i32
  }
  func.func @transform_3(%arg0: i32) -> (i32, i32) {
    %c0_i32 = arith.constant 0 : i32
    %c0_i32_0 = arith.constant 0 : i32
    %c0_i32_1 = arith.constant 0 : i32
    return %c0_i32, %c0_i32_0 : i32, i32
  }
  func.func @transform_4(%arg0: i32) -> (i32, i32) {
    %c0_i32 = arith.constant 0 : i32
    %c0_i32_0 = arith.constant 0 : i32
    %c0_i32_1 = arith.constant 0 : i32
    return %c0_i32, %c0_i32_0 : i32, i32
  }
  func.func @transform_5(%arg0: i32) -> (i32, i32) {
    %c0_i32 = arith.constant 0 : i32
    %c0_i32_0 = arith.constant 0 : i32
    %c0_i32_1 = arith.constant 0 : i32
    return %c0_i32, %c0_i32_0 : i32, i32
  }
  func.func @transform_6(%arg0: i32) -> (i32, i32) {
    %c0_i32 = arith.constant 0 : i32
    %c0_i32_0 = arith.constant 0 : i32
    %c0_i32_1 = arith.constant 0 : i32
    return %c0_i32, %c0_i32_0 : i32, i32
  }
  func.func @transform_7(%arg0: i32) -> (i32, i32) {
    %c0_i32 = arith.constant 0 : i32
    %c0_i32_0 = arith.constant 0 : i32
    return %c0_i32, %arg0 : i32, i32
  }
}

</mosaic_0001>

<bundles_post_ra>
// kernel: tpu_custom_call.1
= control target key start
LH: loop header
LB: loop body
LE: loop exit
PB: predicated region body
PF: predicated region fallthrough
CT: control target
= control target key end

     0   :  { %s2146_s0 = inlined_call_operand.vmem [shape: f32[300,32], index: 0, kind: input, shape index: {}]   ;;  %s2147_s1 = inlined_call_operand.vmem [shape: f32[128,32], index: 1, kind: input, shape index: {}]   ;;  %s2148_s2 = inlined_call_operand.vmem [shape: f32[128,1], index: 2, kind: input, shape index: {}]   ;;  %s2149_s3 = inlined_call_operand.vmem [shape: f32[64,128], index: 3, kind: input, shape index: {}]   ;;  %s2150_s4 = inlined_call_operand.vmem [shape: f32[64,1], index: 4, kind: input, shape index: {}]   ;;  %s2151_s5 = inlined_call_operand.vmem [shape: f32[64,1], index: 5, kind: input, shape index: {}]   ;;  %s2152_s6 = inlined_call_operand.<no memory space> [shape: f32[1,1], index: 6, kind: input, shape index: {}]   ;;  %s2153_s7 = inlined_call_operand.hbm [shape: f32[1,300], index: 7, kind: output, shape index: {}]  }
   0x1   :  { %v12_v0 = vstv %s2152_s6 }
   0x2   :  { %13 = vst [vmem:[#allocation2] sm:$0x1] %v12_v0 }
   0x3   :  { %14 = vsyncpa [#allocation4], 0 }
   0x4   :  { %16 = vsyncpa [#allocation4 + $0x1], 0  ;;  %s1698_s26 = smov 0   ;;  %s1700_s27 = smov 0  }
   0x5   :  { %s1702_s28 = smov 0   ;;  %s1704_s29 = smov 0  }
   0x6 LB: > { %s1719_s6 = sadd.s32 4294967295, %s1649_s29   ;;  %s1323_s30 = sadd.s32 4294967294, %s1649_s29   ;;  %s1649_s29 = sphi %s1704_s29, %s2159_s29   ;;  %s1645_s28 = sphi %s1702_s28, %s2158_s28   ;;  %s1641_s27 = sphi %s1700_s27, %s2157_s27   ;;  %s1637_s26 = sphi %s1698_s26, %s2156_s26  }
   0x7   : > { %s1723_s8 = sadd.s32 1, %s1649_s29   ;;  %s181_s9 = sadd.s32 1, %s1645_s28 }
   0x8   : > { %s178_s10 = ssub.s32 %s1649_s29, %s1723_s8  ;;  %p191_p0 = scmp.ne.s32.totalorder %s1645_s28, %s1641_s27 }
   0x9   : > { %p179_p1 = scmp.eq.s32.totalorder %s178_s10, 0  ;;  %p192_p2 = scmp.eq.s32.totalorder %s1719_s6, 1 }
   0xa   : > { %p197_p3 = scmp.ne.s32.totalorder %s1641_s27, %s1637_s26  ;;  %p198_p4 = scmp.eq.s32.totalorder %s1323_s30, 1 }
   0xb   : > { %s1734_s11 = scalar_select %p179_p1, %s1645_s28, %s181_s9  }
   0xc   : > { %p1736_p5 = por %p192_p2, %p191_p0  ;;  %p1740_p6 = por %p198_p4, %p197_p3 }
   0xd   : > { %p1326_p7 = scmp.ge.s32.totalorder %s1649_s29, 1  ;;  %p251_p8 = scmp.lt.s32.totalorder %s1649_s29, 3 }
   0xf   : > { %p252_p9 = pnand %p1326_p7, %p251_p8 }
  0x10   : > { %s1747_s14 = sshll.u32 (!%p252_p9), %s1719_s6, 5 }
  0x11   : > { %255 = sbr.rel (%p252_p9) target bundleno = 698 (0x2ba), region = 48  ;;  %p292_p10 = scmp.lt.s32.totalorder (!%p252_p9), %s1747_s14, 37 }
  0x16   : > { %vm450_vm0 = vcmask 261120   ;;  %v1752_v1 = vld [vmem:[%s2147_s1] sm:$0xff]  ;;  %v1651_v2 = vmov 0   ;;  %s293_s17 = scalar_select %p292_p10, %s1747_s14, 37  ;;  %v367_v3 = vld [vmem:[%s2148_s2 + $0x68] sm:$0xff]  ;;  %v369_v4 = vld [vmem:[%s2148_s2 + $0x78] sm:$0xff] }
  0x17   : > { %1418 = vmatprep.mubr.msk.f32.mxu0 %vm450_vm0, %v1752_v1  ;;  %1492 = vset.pattern.permute.xlu1 %v1651_v2  ;;  %v366_v5 = vld [vmem:[%s2148_s2 + $0x60] sm:$0xff]  ;;  %v368_v6 = vld [vmem:[%s2148_s2 + $0x70] sm:$0xff]  ;;  %v365_v12 = vld [vmem:[%s2148_s2 + $0x58] sm:$0xff]  ;;  %s1379_s10 = sshll.u32 (%p1736_p5), %s1719_s6, 1 }
  0x18   : > { %1491 = vset.pattern.permute.xlu0 %v1651_v2  ;;  %437 = vperm.xlu1 %1492, %v367_v3   ;;  %s1329_s22 = sshll.u32 %s293_s17, 3  ;;  %v364_v10 = vld [vmem:[%s2148_s2 + $0x50] sm:$0xff]  ;;  %v362_v14 = vld [vmem:[%s2148_s2 + $0x40] sm:$0xff]  ;;  %v363_v18 = vld [vmem:[%s2148_s2 + $0x48] sm:$0xff]  ;;  %s1253_s15 = ssub.s32 (%p1736_p5), 3, %s1379_s10 }
  0x19   : > { %447 = vperm.xlu0 %1491, %v369_v4   ;;  %s1770_s9 = scalar_lea.vmem %s2146_s0, %s1329_s22  ;;  %v360_v19 = vld [vmem:[%s2148_s2 + $0x30] sm:$0xff]  ;;  %v361_v21 = vld [vmem:[%s2148_s2 + $0x38] sm:$0xff]  ;;  %v358_v22 = vld [vmem:[%s2148_s2 + $0x20] sm:$0xff]  ;;  %p1254_p11 = scmp.lt.s32.totalorder (%p1736_p5), %s1253_s15, 2 }
  0x1a   : > { %v337_v7 = vld [vmem:[%s1770_s9 + $0xf8] sm:$0xff]  ;;  %v336_v9 = vld [vmem:[%s1770_s9 + $0xf0] sm:$0xff]  ;;  %v335_v13 = vld [vmem:[%s1770_s9 + $0xe8] sm:$0xff] }
  0x1b   : > { %v321_v8 = vld [vmem:[%s1770_s9 + $0x78] sm:$0xff]  ;;  %1386 = vmatprep.subr.msk.mxu0 %vm450_vm0, %v337_v7  ;;  %v320_v11 = vld [vmem:[%s1770_s9 + $0x70] sm:$0xff]  ;;  %v319_v15 = vld [vmem:[%s1770_s9 + $0x68] sm:$0xff] }
  0x1c   : > { %432 = vperm.xlu1 %1492, %v366_v5   ;;  %1387 = vmatpush3.xpose.msk.msra.mxu0 %vm450_vm0, %v321_v8  ;;  %v334_v16 = vld [vmem:[%s1770_s9 + $0xe0] sm:$0xff]  ;;  %v333_v20 = vld [vmem:[%s1770_s9 + $0xd8] sm:$0xff]  ;;  %v332_v24 = vld [vmem:[%s1770_s9 + $0xd0] sm:$0xff] }
  0x1d   : > { %442 = vperm.xlu0 %1491, %v368_v6   ;;  %1388 = vmatprep.subr.msk.mxu0 %vm450_vm0, %v336_v9  ;;  %v318_v17 = vld [vmem:[%s1770_s9 + $0x60] sm:$0xff]  ;;  %v317_v23 = vld [vmem:[%s1770_s9 + $0x58] sm:$0xff]  ;;  %v359_v25 = vld [vmem:[%s2148_s2 + $0x28] sm:$0xff] }
  0x1e   : > { %v356_v26 = vld [vmem:[%s2148_s2 + $0x10] sm:$0xff]  ;;  %v331_v28 = vld [vmem:[%s1770_s9 + $0xc8] sm:$0xff]  ;;  %v357_v29 = vld [vmem:[%s2148_s2 + $0x18] sm:$0xff] }
  0x1f   : > { %v316_v27 = vld [vmem:[%s1770_s9 + $0x50] sm:$0xff]  ;;  %v354_v30 = vld [vmem:[%s2148_s2] sm:$0xff]  ;;  %v315_v31 = vld [vmem:[%s1770_s9 + $0x48] sm:$0xff] }
  0x20   : > { %422 = vperm.xlu1 %1492, %v364_v10   ;;  %1389 = vmatpush3.xpose.msk.msra.mxu0 %vm450_vm0, %v320_v11  ;;  %v330_v32 = vld [vmem:[%s1770_s9 + $0xc0] sm:$0xff]  ;;  %v355_v33 = vld [vmem:[%s2148_s2 + $0x8] sm:$0xff]  ;;  %v329_v36 = vld [vmem:[%s1770_s9 + $0xb8] sm:$0xff] }
  0x21   : > { %427 = vperm.xlu0 %1491, %v365_v12   ;;  %1390 = vmatprep.subr.msk.mxu0 %vm450_vm0, %v335_v13  ;;  %v893_v34 = vld [vmem:[%s2150_s4 + $0x8] sm:$0xff]  ;;  %v314_v35 = vld [vmem:[%s1770_s9 + $0x40] sm:$0xff]  ;;  %v895_v38 = vld [vmem:[%s2150_s4 + $0x18] sm:$0xff] }
  0x22   : > { %v892_v37 = vld [vmem:[%s2150_s4] sm:$0xff]  ;;  %v313_v39 = vld [vmem:[%s1770_s9 + $0x38] sm:$0xff]  ;;  %v328_v40 = vld [vmem:[%s1770_s9 + $0xb0] sm:$0xff] }
  0x23   : > { %v894_v41 = vld [vmem:[%s2150_s4 + $0x10] sm:$0xff]  ;;  %v897_v42 = vld [vmem:[%s2150_s4 + $0x28] sm:$0xff]  ;;  %v896_v45 = vld [vmem:[%s2150_s4 + $0x20] sm:$0xff] }
  0x24   : > { %412 = vperm.xlu1 %1492, %v362_v14   ;;  %1391 = vmatpush3.xpose.msk.msra.mxu0 %vm450_vm0, %v319_v15  ;;  %v312_v43 = vld [vmem:[%s1770_s9 + $0x30] sm:$0xff]  ;;  %v327_v44 = vld [vmem:[%s1770_s9 + $0xa8] sm:$0xff]  ;;  %v899_v46 = vld [vmem:[%s2150_s4 + $0x38] sm:$0xff] }
  0x25   : > { %1392 = vmatprep.subr.msk.mxu0 %vm450_vm0, %v334_v16  ;;  %417 = vperm.xlu0 %1491, %v363_v18   ;;  %v311_v47 = vld [vmem:[%s1770_s9 + $0x28] sm:$0xff]  ;;  %v326_v48 = vld [vmem:[%s1770_s9 + $0xa0] sm:$0xff]  ;;  %v898_v49 = vld [vmem:[%s2150_s4 + $0x30] sm:$0xff] }
  0x26   : > { %v1118_v50 = vld [vmem:[%s2151_s5 + $0x8] sm:$0xff]  ;;  %v310_v51 = vld [vmem:[%s1770_s9 + $0x20] sm:$0xff]  ;;  %v325_v52 = vld [vmem:[%s1770_s9 + $0x98] sm:$0xff] }
  0x27   : > { %v1117_v53 = vld [vmem:[%s2151_s5] sm:$0xff]  ;;  %v1120_v54 = vld [vmem:[%s2151_s5 + $0x18] sm:$0xff]  ;;  %v324_v56 = vld [vmem:[%s1770_s9 + $0x90] sm:$0xff] }
  0x28   : > { %402 = vperm.xlu1 %1492, %v360_v19   ;;  %1393 = vmatpush3.xpose.msk.msra.mxu0 %vm450_vm0, %v318_v17  ;;  %v309_v55 = vld [vmem:[%s1770_s9 + $0x18] sm:$0xff]  ;;  %v1119_v57 = vld [vmem:[%s2151_s5 + $0x10] sm:$0xff]  ;;  %v1122_v58 = vld [vmem:[%s2151_s5 + $0x28] sm:$0xff]  ;;  %v1652_v19 = vmov 0.0  }
  0x29   : > { %1394 = vmatprep.subr.msk.mxu0 %vm450_vm0, %v333_v20  ;;  %407 = vperm.xlu0 %1491, %v361_v21   ;;  %v308_v59 = vld [vmem:[%s1770_s9 + $0x10] sm:$0xff]  ;;  %v323_v60 = vld [vmem:[%s1770_s9 + $0x88] sm:$0xff]  ;;  %v1121_v61 = vld [vmem:[%s2151_s5 + $0x20] sm:$0xff] }
  0x2a   : > { %v1124_v62 = vld [vmem:[%s2151_s5 + $0x38] sm:$0xff]  ;;  %v307_v63 = vld [vmem:[%s1770_s9 + $0x8] sm:$0xff]  ;;  %v322_v0 = vld [vmem:[%s1770_s9 + $0x80] sm:$0xff]  ;;  %1004 = vmatprep.mubr.f32.mxu1 %v1652_v19 }
  0x2b   : > { %v1123_v2 = vld [vmem:[%s2151_s5 + $0x30] sm:$0xff]  ;;  %v306_v3 = vld [vmem:[%s1770_s9] sm:$0xff]  ;;  %v339_v5 = vld [vmem:[%s2147_s1 + $0x8] sm:$0xff]  ;;  %s284_s9 = sand.u32 1, %s1641_s27  }
  0x2c   : > { %392 = vperm.xlu1 %1492, %v358_v22   ;;  %1395 = vmatpush3.xpose.msk.msra.mxu0 %vm450_vm0, %v317_v23  ;;  %v1207_v4 = vld [vmem:[#allocation2] sm:$0x1]  ;;  %v340_v6 = vld [vmem:[%s2147_s1 + $0x10] sm:$0xff]  ;;  %v341_v7 = vld [vmem:[%s2147_s1 + $0x18] sm:$0xff]  ;;  %s1327_s24 = sshll.u32 %s284_s9, 1  ;;  %s2099_s30 = scalar_lea.sflag [#allocation4], %s284_s9 }
  0x2d   : > { %1396 = vmatprep.subr.msk.mxu0 %vm450_vm0, %v332_v24  ;;  %397 = vperm.xlu0 %1491, %v359_v25   ;;  %v343_v8 = vld [vmem:[%s2147_s1 + $0x28] sm:$0xff]  ;;  %v344_v9 = vld [vmem:[%s2147_s1 + $0x30] sm:$0xff]  ;;  %v345_v10 = vld [vmem:[%s2147_s1 + $0x38] sm:$0xff]  ;;  %s286_s25 = scalar_lea.vmem [#allocation3], %s1327_s24 }
  0x2e   : > { %v346_v11 = vld [vmem:[%s2147_s1 + $0x40] sm:$0xff]  ;;  %v347_v12 = vld [vmem:[%s2147_s1 + $0x48] sm:$0xff]  ;;  %v348_v13 = vld [vmem:[%s2147_s1 + $0x50] sm:$0xff] }
  0x2f   : > { %v349_v14 = vld [vmem:[%s2147_s1 + $0x58] sm:$0xff]  ;;  %v350_v15 = vld [vmem:[%s2147_s1 + $0x60] sm:$0xff]  ;;  %v351_v16 = vld [vmem:[%s2147_s1 + $0x68] sm:$0xff] }
  0x30   : > { %382 = vperm.xlu1 %1492, %v356_v26   ;;  %1397 = vmatpush3.xpose.msk.msra.mxu0 %vm450_vm0, %v316_v27  ;;  %v352_v17 = vld [vmem:[%s2147_s1 + $0x70] sm:$0xff]  ;;  %v353_v18 = vld [vmem:[%s2147_s1 + $0x78] sm:$0xff] }
  0x31   : > { %1398 = vmatprep.subr.msk.mxu0 %vm450_vm0, %v331_v28  ;;  %387 = vperm.xlu0 %1491, %v357_v29  }
  0x34   : > { %372 = vperm.xlu1 %1492, %v354_v30   ;;  %1399 = vmatpush3.xpose.msk.msra.mxu0 %vm450_vm0, %v315_v31 }
  0x35   : > { %1400 = vmatprep.subr.msk.mxu0 %vm450_vm0, %v330_v32  ;;  %377 = vperm.xlu0 %1491, %v355_v33  }
  0x38   : > { %907 = vperm.xlu1 %1492, %v893_v34   ;;  %1401 = vmatpush3.xpose.msk.msra.mxu0 %vm450_vm0, %v314_v35 }
  0x39   : > { %1402 = vmatprep.subr.msk.mxu0 %vm450_vm0, %v329_v36  ;;  %902 = vperm.xlu0 %1491, %v892_v37  }
  0x3c   : > { %917 = vperm.xlu1 %1492, %v895_v38   ;;  %1403 = vmatpush3.xpose.msk.msra.mxu0 %vm450_vm0, %v313_v39 }
  0x3d   : > { %1404 = vmatprep.subr.msk.mxu0 %vm450_vm0, %v328_v40  ;;  %912 = vperm.xlu0 %1491, %v894_v41  }
  0x40   : > { %927 = vperm.xlu1 %1492, %v897_v42   ;;  %1405 = vmatpush3.xpose.msk.msra.mxu0 %vm450_vm0, %v312_v43 }
  0x41   : > { %1406 = vmatprep.subr.msk.mxu0 %vm450_vm0, %v327_v44  ;;  %922 = vperm.xlu0 %1491, %v896_v45  }
  0x44   : > { %937 = vperm.xlu1 %1492, %v899_v46   ;;  %1407 = vmatpush3.xpose.msk.msra.mxu0 %vm450_vm0, %v311_v47 }
  0x45   : > { %1408 = vmatprep.subr.msk.mxu0 %vm450_vm0, %v326_v48  ;;  %932 = vperm.xlu0 %1491, %v898_v49  }
  0x48   : > { %1132 = vperm.xlu1 %1492, %v1118_v50   ;;  %1409 = vmatpush3.xpose.msk.msra.mxu0 %vm450_vm0, %v310_v51 }
  0x49   : > { %1410 = vmatprep.subr.msk.mxu0 %vm450_vm0, %v325_v52  ;;  %1127 = vperm.xlu0 %1491, %v1117_v53  }
  0x4c   : > { %1142 = vperm.xlu1 %1492, %v1120_v54   ;;  %1411 = vmatpush3.xpose.msk.msra.mxu0 %vm450_vm0, %v309_v55 }
  0x4d   : > { %1412 = vmatprep.subr.msk.mxu0 %vm450_vm0, %v324_v56  ;;  %1137 = vperm.xlu0 %1491, %v1119_v57  }
  0x50   : > { %1152 = vperm.xlu1 %1492, %v1122_v58   ;;  %1413 = vmatpush3.xpose.msk.msra.mxu0 %vm450_vm0, %v308_v59 }
  0x51   : > { %1414 = vmatprep.subr.msk.mxu0 %vm450_vm0, %v323_v60  ;;  %1147 = vperm.xlu0 %1491, %v1121_v61  }
  0x54   : > { %1162 = vperm.xlu1 %1492, %v1124_v62   ;;  %1415 = vmatpush3.xpose.msk.msra.mxu0 %vm450_vm0, %v307_v63 }
  0x55   : > { %1416 = vmatprep.subr.msk.mxu0 %vm450_vm0, %v322_v0  ;;  %1157 = vperm.xlu0 %1491, %v1123_v2  }
  0x58   : > { %1417 = vmatpush3.xpose.msk.msra.mxu0 %vm450_vm0, %v306_v3 }
  0x59   : > { %1210 = vperm.xlu0 %1491, %v1207_v4  }
  0x5b   : > { %1419 = vmatmul.mubr.msk.f32.vlgmr.msra.gmra.mxu0 %vm450_vm0, %v1752_v1  ;;  %v342_v1 = vld [vmem:[%s2147_s1 + $0x20] sm:$0xff] }
  0x5c   : > { %1420 = vmatprep.mubr.msk.f32.mxu0 %vm450_vm0, %v339_v5 }
  0x5f   : > { %1421 = vmatmul.mubr.msk.f32.gmra.mxu0 %vm450_vm0, %v339_v5 }
  0x60   : > { %1422 = vmatprep.mubr.msk.f32.mxu0 %vm450_vm0, %v340_v6 }
  0x63   : > { %1423 = vmatmul.mubr.msk.f32.gmra.mxu0 %vm450_vm0, %v340_v6 }
  0x64   : > { %1424 = vmatprep.mubr.msk.f32.mxu0 %vm450_vm0, %v341_v7 }
  0x67   : > { %1425 = vmatmul.mubr.msk.f32.gmra.mxu0 %vm450_vm0, %v341_v7 }
  0x68   : > { %1426 = vmatprep.mubr.msk.f32.mxu0 %vm450_vm0, %v342_v1 }
  0x6b   : > { %1427 = vmatmul.mubr.msk.f32.gmra.mxu0 %vm450_vm0, %v342_v1 }
  0x6c   : > { %1428 = vmatprep.mubr.msk.f32.mxu0 %vm450_vm0, %v343_v8 }
  0x6f   : > { %1429 = vmatmul.mubr.msk.f32.gmra.mxu0 %vm450_vm0, %v343_v8 }
  0x70   : > { %1430 = vmatprep.mubr.msk.f32.mxu0 %vm450_vm0, %v344_v9 }
  0x73   : > { %1431 = vmatmul.mubr.msk.f32.gmra.mxu0 %vm450_vm0, %v344_v9 }
  0x74   : > { %1432 = vmatprep.mubr.msk.f32.mxu0 %vm450_vm0, %v345_v10 }
  0x77   : > { %1433 = vmatmul.mubr.msk.f32.gmra.mxu0 %vm450_vm0, %v345_v10 }
  0x78   : > { %1434 = vmatprep.mubr.msk.f32.mxu0 %vm450_vm0, %v346_v11 }
  0x7b   : > { %1435 = vmatmul.mubr.msk.f32.gmra.mxu0 %vm450_vm0, %v346_v11 }
  0x7c   : > { %1436 = vmatprep.mubr.msk.f32.mxu0 %vm450_vm0, %v347_v12 }
  0x7f   : > { %1437 = vmatmul.mubr.msk.f32.gmra.mxu0 %vm450_vm0, %v347_v12 }
  0x80   : > { %1438 = vmatprep.mubr.msk.f32.mxu0 %vm450_vm0, %v348_v13 }
  0x83   : > { %1439 = vmatmul.mubr.msk.f32.gmra.mxu0 %vm450_vm0, %v348_v13 }
  0x84   : > { %1440 = vmatprep.mubr.msk.f32.mxu0 %vm450_vm0, %v349_v14 }
  0x87   : > { %1441 = vmatmul.mubr.msk.f32.gmra.mxu0 %vm450_vm0, %v349_v14 }
  0x88   : > { %1442 = vmatprep.mubr.msk.f32.mxu0 %vm450_vm0, %v350_v15 }
  0x8b   : > { %1443 = vmatmul.mubr.msk.f32.gmra.mxu0 %vm450_vm0, %v350_v15 }
  0x8c   : > { %1444 = vmatprep.mubr.msk.f32.mxu0 %vm450_vm0, %v351_v16 }
  0x8f   : > { %1445 = vmatmul.mubr.msk.f32.gmra.mxu0 %vm450_vm0, %v351_v16 }
  0x90   : > { %1446 = vmatprep.mubr.msk.f32.mxu0 %vm450_vm0, %v352_v17 }
  0x93   : > { %1447 = vmatmul.mubr.msk.f32.gmra.mxu0 %vm450_vm0, %v352_v17  ;;  %v438_v35 = vpop.permute.xlu1 %437 }
  0x94   : > { %1448 = vmatprep.mubr.msk.f32.mxu0 %vm450_vm0, %v353_v18  ;;  %v448_v37 = vpop.permute.xlu0 %447 }
  0x97   : > { %1449 = vmatmul.mubr.msk.f32.gmra.mxu0 %vm450_vm0, %v353_v18  ;;  %v433_v40 = vpop.permute.xlu1 %432 }
  0x98   : > { %v443_v42 = vpop.permute.xlu0 %442 }
  0x9b   : > { %v423_v45 = vpop.permute.xlu1 %422 }
  0x9c   : > { %v428_v47 = vpop.permute.xlu0 %427 }
  0x9f   : > { %v413_v50 = vpop.permute.xlu1 %412 }
  0xa0   : > { %v418_v52 = vpop.permute.xlu0 %417 }
  0xa3   : > { %v403_v55 = vpop.permute.xlu1 %402 }
  0xa4   : > { %v408_v58 = vpop.permute.xlu0 %407 }
  0xa7   : > { %v2033_v0 = vpop.permute.xlu1 %392 }
  0xa8   : > { %v398_v7 = vpop.permute.xlu0 %397 }
  0xab   : > { %v2035_v18 = vpop.permute.xlu1 %382 }
 0x11b   : > { %v2001_v20 = vpop.f32.mrf.mxu0 }
 0x11d   : > { %v2003_v21 = vpop.f32.mrf.mxu0 }
 0x11f   : > { %v2005_v22 = vpop.f32.mrf.mxu0 }
 0x121   : > { %v2007_v23 = vpop.f32.mrf.mxu0 }
 0x123   : > { %v2009_v24 = vpop.f32.mrf.mxu0 }
 0x125   : > { %v2011_v25 = vpop.f32.mrf.mxu0 }
 0x127   : > { %v2013_v26 = vpop.f32.mrf.mxu0 }
 0x129   : > { %v2015_v27 = vpop.f32.mrf.mxu0 }
 0x12b   : > { %v2017_v28 = vpop.f32.mrf.mxu0 }
 0x12d   : > { %v2019_v29 = vpop.f32.mrf.mxu0 }
 0x12f   : > { %v2021_v30 = vpop.f32.mrf.mxu0 }
 0x131   : > { %v2023_v31 = vpop.f32.mrf.mxu0 }
 0x133   : > { %v2025_v32 = vpop.f32.mrf.mxu0 }
 0x135   : > { %v2027_v33 = vpop.f32.mrf.mxu0 }
 0x137   : > { %v2029_v34 = vpop.f32.mrf.mxu0 }
 0x139   : > { %v2031_v36 = vpop.f32.mrf.mxu0 }
 0x13b   : > { %v709_v38 = vpop.f32.mrf.mxu0 }
 0x13d   : > { %v711_v39 = vpop.f32.mrf.mxu0 }
 0x13f   : > { %v715_v41 = vpop.f32.mrf.mxu0 }
 0x141   : > { %v717_v43 = vpop.f32.mrf.mxu0 }
 0x143   : > { %v721_v44 = vpop.f32.mrf.mxu0 }
 0x145   : > { %v723_v46 = vpop.f32.mrf.mxu0 }
 0x146   : > { %v724_v15 = vadd.f32 %v723_v46, %v423_v45 }
 0x147   : > { %v727_v48 = vpop.f32.mrf.mxu0 }
 0x148   : > { %v728_v13 = vadd.f32 %v727_v48, %v428_v47  ;;  %v710_v48 = vadd.f32 %v709_v38, %v413_v50 }
 0x149   : > { %v729_v49 = vpop.f32.mrf.mxu0 }
 0x14a   : > { %v730_v10 = vadd.f32 %v729_v49, %v428_v47  ;;  %v716_v49 = vadd.f32 %v715_v41, %v418_v52  ;;  %v777_v47 = vmul.f32 0.5, %v724_v15 }
 0x14b   : > { %v733_v51 = vpop.f32.mrf.mxu0 }
 0x14c   : > { %v734_v1 = vadd.f32 %v733_v51, %v433_v40  ;;  %v388_v51 = vpop.permute.xlu0 %387 }
 0x14d   : > { %v735_v53 = vpop.f32.mrf.mxu0 }
 0x14e   : > { %v736_v4 = vadd.f32 %v735_v53, %v433_v40  ;;  %v718_v53 = vadd.f32 %v717_v43, %v418_v52  ;;  %v779_v40 = vmul.f32 0.5, %v730_v10  ;;  %v774_v43 = vmul.f32 0.5, %v716_v49 }
 0x14f   : > { %v739_v54 = vpop.f32.mrf.mxu0 }
 0x150   : > { %v740_v2 = vadd.f32 %v739_v54, %v438_v35  ;;  %v781_v16 = vmul.f32 0.5, %v736_v4  ;;  %v778_v54 = vmul.f32 0.5, %v728_v13  ;;  %v378_v52 = vpop.permute.xlu0 %377  ;;  %v682_v4 = vadd.f32 %v2015_v27, %v388_v51 }
 0x151   : > { %v741_v56 = vpop.f32.mrf.mxu0 }
 0x152   : > { %v742_v57 = vadd.f32 %v741_v56, %v438_v35  ;;  %v782_v14 = vmul.f32 0.5, %v740_v2  ;;  %v722_v35 = vadd.f32 %v721_v44, %v423_v45  ;;  %v706_v56 = vadd.f32 %v2031_v36, %v408_v58  ;;  %v373_v44 = vpop.permute.xlu1 %372 }
 0x153   : > { %v745_v59 = vpop.f32.mrf.mxu0  ;;  %v704_v45 = vadd.f32 %v2029_v34, %v408_v58  ;;  %v2042_v38 = vadd.f32 %v2001_v20, %v373_v44  ;;  %v694_v36 = vadd.f32 %v2023_v31, %v398_v7  ;;  %v2046_v34 = vadd.f32 %v2003_v21, %v373_v44 }
 0x154   : > { %v746_v60 = vadd.f32 %v745_v59, %v443_v42  ;;  %v783_v62 = vmul.f32 0.5, %v742_v57  ;;  %v776_v46 = vmul.f32 0.5, %v722_v35  ;;  %v775_v57 = vmul.f32 0.5, %v718_v53 }
 0x155   : > { %v747_v61 = vpop.f32.mrf.mxu0  ;;  %v700_v59 = vadd.f32 %v2027_v33, %v403_v55  ;;  %v692_v33 = vadd.f32 %v2021_v30, %v398_v7  ;;  %v770_v58 = vmul.f32 0.5, %v704_v45  ;;  %v670_v31 = vadd.f32 %v2007_v23, %v378_v52 }
 0x156   : > { %v748_v63 = vadd.f32 %v747_v61, %v443_v42  ;;  %v784_v8 = vmul.f32 0.5, %v746_v60  ;;  %1493 = vtanh.f32 %v783_v62  ;;  %v780_v42 = vmul.f32 0.5, %v734_v1 }
 0x157   : > { %v751_v3 = vpop.f32.mrf.mxu0  ;;  %v772_v60 = vmul.f32 0.5, %v710_v48  ;;  %v769_v20 = vmul.f32 0.5, %v700_v59  ;;  %v686_v2 = vadd.f32 %v2017_v28, %v2033_v0  ;;  %v676_v30 = vadd.f32 %v2011_v25, %v2035_v18 }
 0x158   : > { %v785_v5 = vmul.f32 0.5, %v748_v63  ;;  %v752_v6 = vadd.f32 %v751_v3, %v448_v37  ;;  %v757_v45 = vmul.f32 0.5, %v2046_v34 }
 0x159   : > { %v753_v9 = vpop.f32.mrf.mxu0  ;;  %v764_v25 = vmul.f32 0.5, %v686_v2  ;;  %v761_v35 = vmul.f32 0.5, %v676_v30 }
 0x15a   : > { %v786_v11 = vmul.f32 0.5, %v752_v6  ;;  %v754_v12 = vadd.f32 %v753_v9, %v448_v37  ;;  %1495 = vtanh.f32 %v785_v5  ;;  %v712_v37 = vadd.f32 %v711_v39, %v413_v50 }
 0x15b   : > { %v698_v39 = vadd.f32 %v2025_v32, %v403_v55  ;;  %v771_v50 = vmul.f32 0.5, %v706_v56  ;;  %v668_v32 = vadd.f32 %v2005_v22, %v378_v52  ;;  %v688_v55 = vadd.f32 %v2019_v29, %v2033_v0 }
 0x15c   : > { %1497 = vtanh.f32 %v786_v11  ;;  %v787_v17 = vmul.f32 0.5, %v754_v12  ;;  %v773_v41 = vmul.f32 0.5, %v712_v37  ;;  %v767_v22 = vmul.f32 0.5, %v694_v36 }
 0x15d   : > { %1499 = vtanh.f32 %v784_v8  ;;  %v768_v21 = vmul.f32 0.5, %v698_v39  ;;  %v680_v29 = vadd.f32 %v2013_v26, %v388_v51  ;;  %v766_v6 = vmul.f32 0.5, %v692_v33 }
 0x15e   : > { %1501 = vtanh.f32 %v787_v17  ;;  %v765_v1 = vmul.f32 0.5, %v688_v55  ;;  %v674_v9 = vadd.f32 %v2009_v24, %v2035_v18  ;;  %v763_v11 = vmul.f32 0.5, %v682_v4 }
 0x15f   : > { %1503 = vtanh.f32 %v782_v14  ;;  %v762_v14 = vmul.f32 0.5, %v680_v29  ;;  %v756_v52 = vmul.f32 0.5, %v2042_v38 }
 0x160   : > { %1505 = vtanh.f32 %v781_v16  ;;  %v760_v18 = vmul.f32 0.5, %v674_v9 }
 0x161   : > { %1507 = vtanh.f32 %v780_v42 }
 0x162   : > { %1509 = vtanh.f32 %v779_v40 }
 0x163   : > { %1511 = vtanh.f32 %v778_v54  ;;  %v1494_v61 = vpop.eup %1493  ;;  %v759_v54 = vmul.f32 0.5, %v670_v31 }
 0x164   : > { %1513 = vtanh.f32 %v777_v47  ;;  %v847_v26 = vmul.f32 0.5, %v1494_v61 }
 0x165   : > { %1515 = vtanh.f32 %v776_v46  ;;  %v758_v46 = vmul.f32 0.5, %v668_v32 }
 0x166   : > { %1517 = vtanh.f32 %v775_v57  ;;  %v879_v37 = vadd.f32 0.5, %v847_v26 }
 0x167   : > { %1519 = vtanh.f32 %v774_v43  ;;  %v1496_v62 = vpop.eup %1495 }
 0x168   : > { %1521 = vtanh.f32 %v773_v41  ;;  %v849_v0 = vmul.f32 0.5, %v1496_v62 }
 0x169   : > { %v1498_v63 = vpop.eup %1497  ;;  %1523 = vtanh.f32 %v772_v60 }
 0x16a   : > { %v1500_v3 = vpop.eup %1499  ;;  %1525 = vtanh.f32 %v771_v50  ;;  %v850_v7 = vmul.f32 0.5, %v1498_v63  ;;  %v881_v42 = vadd.f32 0.5, %v849_v0 }
 0x16b   : > { %v1502_v5 = vpop.eup %1501  ;;  %1527 = vtanh.f32 %v770_v58  ;;  %v848_v27 = vmul.f32 0.5, %v1500_v3 }
 0x16c   : > { %v1504_v23 = vpop.eup %1503  ;;  %1529 = vtanh.f32 %v769_v20  ;;  %v851_v28 = vmul.f32 0.5, %v1502_v5  ;;  %v882_v15 = vadd.f32 0.5, %v850_v7 }
 0x16d   : > { %v1506_v8 = vpop.eup %1505  ;;  %1531 = vtanh.f32 %v768_v21  ;;  %v846_v16 = vmul.f32 0.5, %v1504_v23  ;;  %v880_v40 = vadd.f32 0.5, %v848_v27 }
 0x16e   : > { %v1508_v10 = vpop.eup %1507  ;;  %1533 = vtanh.f32 %v767_v22  ;;  %v883_v12 = vadd.f32 0.5, %v851_v28  ;;  %v845_v53 = vmul.f32 0.5, %v1506_v8 }
 0x16f   : > { %v1510_v13 = vpop.eup %1509  ;;  %1535 = vtanh.f32 %v766_v6  ;;  %v844_v51 = vmul.f32 0.5, %v1508_v10  ;;  %v878_v56 = vadd.f32 0.5, %v846_v16 }
 0x170   : > { %v1512_v17 = vpop.eup %1511  ;;  %1537 = vtanh.f32 %v765_v1  ;;  %940 = vmatprep.subr.mxu1 %v883_v12  ;;  %v843_v47 = vmul.f32 0.5, %v1510_v13  ;;  %v877_v43 = vadd.f32 0.5, %v845_v53 }
 0x171   : > { %v1514_v24 = vpop.eup %1513  ;;  %1539 = vtanh.f32 %v764_v25  ;;  %941 = vmatpush1.msra.mxu1 %v882_v15  ;;  %v842_v57 = vmul.f32 0.5, %v1512_v17  ;;  %v876_v39 = vadd.f32 0.5, %v844_v51 }
 0x172   : > { %v1516_v49 = vpop.eup %1515  ;;  %1541 = vtanh.f32 %v763_v11  ;;  %942 = vmatprep.subr.mxu1 %v881_v42  ;;  %v841_v59 = vmul.f32 0.5, %v1514_v24  ;;  %v875_v50 = vadd.f32 0.5, %v843_v47 }
 0x173   : > { %v1518_v48 = vpop.eup %1517  ;;  %1543 = vtanh.f32 %v762_v14  ;;  %943 = vmatpush1.msra.mxu1 %v880_v40  ;;  %v840_v60 = vmul.f32 0.5, %v1516_v49  ;;  %v874_v34 = vadd.f32 0.5, %v842_v57 }
 0x174   : > { %v1520_v44 = vpop.eup %1519  ;;  %1545 = vtanh.f32 %v761_v35  ;;  %944 = vmatprep.subr.mxu1 %v879_v37  ;;  %v839_v61 = vmul.f32 0.5, %v1518_v48  ;;  %v873_v32 = vadd.f32 0.5, %v841_v59 }
 0x175   : > { %v1522_v41 = vpop.eup %1521  ;;  %1547 = vtanh.f32 %v760_v18  ;;  %945 = vmatpush1.msra.mxu1 %v878_v56  ;;  %v838_v58 = vmul.f32 0.5, %v1520_v44  ;;  %v872_v20 = vadd.f32 0.5, %v840_v60  ;;  %v885_v60 = vld [vmem:[%s2149_s3 + $0x8] sm:$0xff] }
 0x176   : > { %v1524_v36 = vpop.eup %1523  ;;  %1549 = vtanh.f32 %v759_v54  ;;  %946 = vmatprep.subr.mxu1 %v877_v43  ;;  %v837_v55 = vmul.f32 0.5, %v1522_v41  ;;  %v871_v2 = vadd.f32 0.5, %v839_v61  ;;  %v888_v61 = vld [vmem:[%s2149_s3 + $0x20] sm:$0xff] }
 0x177   : > { %v1526_v33 = vpop.eup %1525  ;;  %1551 = vtanh.f32 %v758_v46  ;;  %947 = vmatpush1.msra.mxu1 %v876_v39  ;;  %v836_v63 = vmul.f32 0.5, %v1524_v36  ;;  %v870_v30 = vadd.f32 0.5, %v838_v58  ;;  %v884_v39 = vld [vmem:[%s2149_s3] sm:$0xff]  ;;  %v886_v36 = vld [vmem:[%s2149_s3 + $0x10] sm:$0xff]  ;;  %v891_v58 = vld [vmem:[%s2149_s3 + $0x38] sm:$0xff] }
 0x178   : > { %v1528_v62 = vpop.eup %1527  ;;  %1553 = vtanh.f32 %v757_v45  ;;  %948 = vmatprep.subr.mxu1 %v875_v50  ;;  %v835_v21 = vmul.f32 0.5, %v1526_v33  ;;  %v869_v5 = vadd.f32 0.5, %v837_v55  ;;  %v887_v50 = vld [vmem:[%s2149_s3 + $0x18] sm:$0xff]  ;;  %v889_v33 = vld [vmem:[%s2149_s3 + $0x28] sm:$0xff] }
 0x179   : > { %v1530_v38 = vpop.eup %1529  ;;  %1555 = vtanh.f32 %v756_v52  ;;  %949 = vmatpush1.msra.mxu1 %v874_v34  ;;  %v834_v4 = vmul.f32 0.5, %v1528_v62  ;;  %v868_v7 = vadd.f32 0.5, %v836_v63  ;;  %v890_v34 = vld [vmem:[%s2149_s3 + $0x30] sm:$0xff] }
 0x17a   : > { %v1532_v31 = vpop.eup %1531  ;;  %950 = vmatprep.subr.mxu1 %v873_v32  ;;  %v833_v29 = vmul.f32 0.5, %v1530_v38  ;;  %v867_v28 = vadd.f32 0.5, %v835_v21  ;;  %v903_v32 = vpop.permute.xlu0 %902 }
 0x17b   : > { %v1534_v3 = vpop.eup %1533  ;;  %951 = vmatpush1.msra.mxu1 %v872_v20  ;;  %v832_v23 = vmul.f32 0.5, %v1532_v31  ;;  %v866_v9 = vadd.f32 0.5, %v834_v4  ;;  %v908_v20 = vpop.permute.xlu1 %907 }
 0x17c   : > { %v1536_v22 = vpop.eup %1535  ;;  %952 = vmatprep.subr.mxu1 %v871_v2  ;;  %v831_v0 = vmul.f32 0.5, %v1534_v3  ;;  %v865_v10 = vadd.f32 0.5, %v833_v29 }
 0x17d   : > { %v1538_v6 = vpop.eup %1537  ;;  %953 = vmatpush1.msra.mxu1 %v870_v30  ;;  %v830_v25 = vmul.f32 0.5, %v1536_v22  ;;  %v864_v26 = vadd.f32 0.5, %v832_v23 }
 0x17e   : > { %v1540_v1 = vpop.eup %1539  ;;  %954 = vmatprep.subr.mxu1 %v869_v5  ;;  %v829_v11 = vmul.f32 0.5, %v1538_v6  ;;  %v863_v15 = vadd.f32 0.5, %v831_v0  ;;  %v913_v4 = vpop.permute.xlu0 %912 }
 0x17f   : > { %v1542_v8 = vpop.eup %1541  ;;  %955 = vmatpush1.msra.mxu1 %v868_v7  ;;  %v828_v13 = vmul.f32 0.5, %v1540_v1  ;;  %v862_v35 = vadd.f32 0.5, %v830_v25 }
 0x180   : > { %v1544_v27 = vpop.eup %1543  ;;  %956 = vmatprep.subr.mxu1 %v867_v28  ;;  %v827_v16 = vmul.f32 0.5, %v1542_v8  ;;  %v861_v24 = vadd.f32 0.5, %v829_v11  ;;  %v918_v28 = vpop.permute.xlu1 %917 }
 0x181   : > { %v1546_v12 = vpop.eup %1545  ;;  %957 = vmatpush1.msra.mxu1 %v866_v9  ;;  %v826_v42 = vmul.f32 0.5, %v1544_v27  ;;  %v860_v51 = vadd.f32 0.5, %v828_v13 }
 0x182   : > { %v1548_v14 = vpop.eup %1547  ;;  %958 = vmatprep.subr.mxu1 %v865_v10  ;;  %v825_v18 = vmul.f32 0.5, %v1546_v12  ;;  %v859_v37 = vadd.f32 0.5, %v827_v16  ;;  %v923_v11 = vpop.permute.xlu0 %922 }
 0x183   : > { %v1550_v17 = vpop.eup %1549  ;;  %959 = vmatpush1.msra.mxu1 %v864_v26  ;;  %v824_v49 = vmul.f32 0.5, %v1548_v14  ;;  %v858_v48 = vadd.f32 0.5, %v826_v42 }
 0x184   : > { %v1552_v53 = vpop.eup %1551  ;;  %960 = vmatprep.subr.mxu1 %v863_v15  ;;  %v823_v47 = vmul.f32 0.5, %v1550_v17  ;;  %v857_v56 = vadd.f32 0.5, %v825_v18 }
 0x185   : > { %v1554_v40 = vpop.eup %1553  ;;  %961 = vmatpush1.msra.mxu1 %v862_v35  ;;  %v822_v46 = vmul.f32 0.5, %v1552_v53  ;;  %v856_v44 = vadd.f32 0.5, %v824_v49  ;;  %v928_v35 = vpop.permute.xlu1 %927 }
 0x186   : > { %v1556_v54 = vpop.eup %1555  ;;  %962 = vmatprep.subr.mxu1 %v861_v24  ;;  %v821_v57 = vmul.f32 0.5, %v1554_v40  ;;  %v855_v43 = vadd.f32 0.5, %v823_v47  ;;  %v933_v18 = vpop.permute.xlu0 %932 }
 0x187   : > { %963 = vmatpush1.msra.mxu1 %v860_v51  ;;  %v820_v45 = vmul.f32 0.5, %v1556_v54  ;;  %v854_v59 = vadd.f32 0.5, %v822_v46 }
 0x188   : > { %964 = vmatprep.subr.mxu1 %v859_v37  ;;  %v853_v41 = vadd.f32 0.5, %v821_v57 }
 0x189   : > { %965 = vmatpush1.msra.mxu1 %v858_v48  ;;  %v852_v52 = vadd.f32 0.5, %v820_v45 }
 0x18a   : > { %966 = vmatprep.subr.mxu1 %v857_v56 }
 0x18b   : > { %967 = vmatpush1.msra.mxu1 %v856_v44  ;;  %v938_v44 = vpop.permute.xlu1 %937 }
 0x18c   : > { %968 = vmatprep.subr.mxu1 %v855_v43 }
 0x18d   : > { %969 = vmatpush1.msra.mxu1 %v854_v59 }
 0x18e   : > { %970 = vmatprep.subr.mxu1 %v853_v41 }
 0x18f   : > { %971 = vmatpush1.msra.mxu1 %v852_v52 }
 0x190   : > { %1005 = vmatmul.mubr.f32.vlgmr.msra.gmra.mxu1 %v884_v39  ;;  %v1128_v39 = vpop.permute.xlu0 %1127 }
 0x191   : > { %1010 = vmatprep.mubr.f32.mxu1 %v1652_v19 }
 0x194   : > { %1011 = vmatmul.mubr.f32.gmra.mxu1 %v885_v60 }
 0x195   : > { %1016 = vmatprep.mubr.f32.mxu1 %v1652_v19 }
 0x198   : > { %1017 = vmatmul.mubr.f32.gmra.mxu1 %v886_v36 }
 0x199   : > { %1022 = vmatprep.mubr.f32.mxu1 %v1652_v19 }
 0x19c   : > { %1023 = vmatmul.mubr.f32.gmra.mxu1 %v887_v50 }
 0x19d   : > { %1028 = vmatprep.mubr.f32.mxu1 %v1652_v19 }
 0x1a0   : > { %1029 = vmatmul.mubr.f32.gmra.mxu1 %v888_v61 }
 0x1a1   : > { %1034 = vmatprep.mubr.f32.mxu1 %v1652_v19 }
 0x1a4   : > { %1035 = vmatmul.mubr.f32.gmra.mxu1 %v889_v33 }
 0x1a5   : > { %1040 = vmatprep.mubr.f32.mxu1 %v1652_v19 }
 0x1a8   : > { %1041 = vmatmul.mubr.f32.gmra.mxu1 %v890_v34 }
 0x1a9   : > { %1046 = vmatprep.mubr.f32.mxu1 %v1652_v19 }
 0x1ac   : > { %1047 = vmatmul.mubr.f32.gmra.mxu1 %v891_v58 }
 0x250   : > { %v1006_v62 = vpop.f32.mrf.mxu1 }
 0x251   : > { %v1007_v38 = vadd.f32 %v1006_v62, %v903_v32 }
 0x252   : > { %v1008_v55 = vpop.f32.mrf.mxu1 }
 0x253   : > { %v1009_v63 = vadd.f32 %v1008_v55, %v903_v32  ;;  %v1053_v3 = vmul.f32 0.5, %v1007_v38 }
 0x254   : > { %v1012_v31 = vpop.f32.mrf.mxu1 }
 0x255   : > { %v1013_v2 = vadd.f32 %v1012_v31, %v908_v20  ;;  %v1054_v22 = vmul.f32 0.5, %v1009_v63  ;;  %1557 = vtanh.f32 %v1053_v3  ;;  %v1133_v63 = vpop.permute.xlu1 %1132 }
 0x256   : > { %v1014_v21 = vpop.f32.mrf.mxu1 }
 0x257   : > { %v1015_v30 = vadd.f32 %v1014_v21, %v908_v20  ;;  %v1055_v5 = vmul.f32 0.5, %v1013_v2  ;;  %1559 = vtanh.f32 %v1054_v22  ;;  %v1138_v22 = vpop.permute.xlu0 %1137 }
 0x258   : > { %v1018_v19 = vpop.f32.mrf.mxu1 }
 0x259   : > { %v1019_v29 = vadd.f32 %v1018_v19, %v913_v4  ;;  %v1056_v6 = vmul.f32 0.5, %v1015_v30  ;;  %1561 = vtanh.f32 %v1055_v5 }
 0x25a   : > { %v1020_v7 = vpop.f32.mrf.mxu1 }
 0x25b   : > { %v1057_v23 = vmul.f32 0.5, %v1019_v29  ;;  %v1021_v1 = vadd.f32 %v1020_v7, %v913_v4  ;;  %1563 = vtanh.f32 %v1056_v6 }
 0x25c   : > { %v1024_v0 = vpop.f32.mrf.mxu1 }
 0x25d   : > { %v1058_v8 = vmul.f32 0.5, %v1021_v1  ;;  %v1025_v9 = vadd.f32 %v1024_v0, %v918_v28  ;;  %1565 = vtanh.f32 %v1057_v23 }
 0x25e   : > { %v1026_v25 = vpop.f32.mrf.mxu1 }
 0x25f   : > { %v1059_v27 = vmul.f32 0.5, %v1025_v9  ;;  %v1027_v10 = vadd.f32 %v1026_v25, %v918_v28  ;;  %1567 = vtanh.f32 %v1058_v8 }
 0x260   : > { %v1030_v12 = vpop.f32.mrf.mxu1 }
 0x261   : > { %1569 = vtanh.f32 %v1059_v27  ;;  %v1060_v26 = vmul.f32 0.5, %v1027_v10  ;;  %v1031_v13 = vadd.f32 %v1030_v12, %v923_v11  ;;  %v1143_v27 = vpop.permute.xlu1 %1142 }
 0x262   : > { %v1032_v14 = vpop.f32.mrf.mxu1  ;;  %v1558_v40 = vpop.eup %1557 }
 0x263   : > { %1571 = vtanh.f32 %v1060_v26  ;;  %v1061_v15 = vmul.f32 0.5, %v1031_v13  ;;  %v1033_v16 = vadd.f32 %v1032_v14, %v923_v11  ;;  %v1085_v50 = vmul.f32 0.5, %v1558_v40 }
 0x264   : > { %v1036_v17 = vpop.f32.mrf.mxu1  ;;  %v1560_v37 = vpop.eup %1559 }
 0x265   : > { %1573 = vtanh.f32 %v1061_v15  ;;  %v1062_v42 = vmul.f32 0.5, %v1033_v16  ;;  %v1037_v53 = vadd.f32 %v1036_v17, %v928_v35  ;;  %v1086_v55 = vmul.f32 0.5, %v1560_v37  ;;  %v1148_v16 = vpop.permute.xlu0 %1147 }
 0x266   : > { %v1038_v24 = vpop.f32.mrf.mxu1  ;;  %v1562_v48 = vpop.eup %1561  ;;  %v1101_v30 = vadd.f32 0.5, %v1085_v50 }
 0x267   : > { %1575 = vtanh.f32 %v1062_v42  ;;  %v1063_v51 = vmul.f32 0.5, %v1037_v53  ;;  %v1039_v49 = vadd.f32 %v1038_v24, %v928_v35  ;;  %v1087_v60 = vmul.f32 0.5, %v1562_v48 }
 0x268   : > { %v1042_v54 = vpop.f32.mrf.mxu1  ;;  %v1564_v57 = vpop.eup %1563  ;;  %v1102_v23 = vadd.f32 0.5, %v1086_v55  ;;  %v1165_v9 = vmul.f32 %v1128_v39, %v1101_v30  ;;  %v1213_v30 = vlaneseq }
 0x269   : > { %v1043_v47 = vadd.f32 %v1042_v54, %v933_v18  ;;  %1577 = vtanh.f32 %v1063_v51  ;;  %v1064_v46 = vmul.f32 0.5, %v1039_v49  ;;  %v1088_v58 = vmul.f32 0.5, %v1564_v57 }
 0x26a   : > { %v1044_v56 = vpop.f32.mrf.mxu1  ;;  %v1566_v43 = vpop.eup %1565  ;;  %v1103_v31 = vadd.f32 0.5, %v1087_v60  ;;  %v1166_v13 = vmul.f32 %v1128_v39, %v1102_v23  ;;  %vm1241_vm1 = vcmp.lt.s32.totalorder %v1213_v30, 256 }
 0x26b   : > { %v1065_v45 = vmul.f32 0.5, %v1043_v47  ;;  %1579 = vtanh.f32 %v1064_v46  ;;  %v1045_v59 = vadd.f32 %v1044_v56, %v933_v18  ;;  %v1089_v62 = vmul.f32 0.5, %v1566_v43  ;;  %v1153_v56 = vpop.permute.xlu1 %1152  ;;  %v1158_v39 = vpop.permute.xlu0 %1157 }
 0x26c   : > { %v1048_v41 = vpop.f32.mrf.mxu1  ;;  %v1568_v52 = vpop.eup %1567  ;;  %v1104_v19 = vadd.f32 0.5, %v1088_v58  ;;  %v1167_v1 = vmul.f32 %v1133_v63, %v1103_v31 }
 0x26d   : > { %1581 = vtanh.f32 %v1065_v45  ;;  %v1066_v61 = vmul.f32 0.5, %v1045_v59  ;;  %v1049_v33 = vadd.f32 %v1048_v41, %v938_v44  ;;  %v1090_v2 = vmul.f32 0.5, %v1568_v52 }
 0x26e   : > { %v1570_v36 = vpop.eup %1569  ;;  %v1050_v34 = vpop.f32.mrf.mxu1  ;;  %v1105_v5 = vadd.f32 0.5, %v1089_v62  ;;  %v1168_v10 = vmul.f32 %v1133_v63, %v1104_v19  ;;  %v1181_v17 = vadd.f32 %v1167_v1, %v1165_v9 }
 0x26f   : > { %1583 = vtanh.f32 %v1066_v61  ;;  %v1067_v38 = vmul.f32 0.5, %v1049_v33  ;;  %v1051_v20 = vadd.f32 %v1050_v34, %v938_v44  ;;  %v1091_v21 = vmul.f32 0.5, %v1570_v36  ;;  %v1163_v63 = vpop.permute.xlu1 %1162 }
 0x270   : > { %v1572_v32 = vpop.eup %1571  ;;  %v1106_v28 = vadd.f32 0.5, %v1090_v2  ;;  %v1169_v11 = vmul.f32 %v1138_v22, %v1105_v5  ;;  %v1194_v51 = vadd.f32 %v1168_v10, %v1166_v13 }
 0x271   : > { %1585 = vtanh.f32 %v1067_v38  ;;  %v1068_v4 = vmul.f32 0.5, %v1051_v20  ;;  %v1092_v29 = vmul.f32 0.5, %v1572_v32  ;;  %v1107_v0 = vadd.f32 0.5, %v1091_v21 }
 0x272   : > { %v1574_v3 = vpop.eup %1573  ;;  %v1170_v35 = vmul.f32 %v1138_v22, %v1106_v28  ;;  %v1182_v49 = vadd.f32 %v1181_v17, %v1169_v11 }
 0x273   : > { %v1093_v6 = vmul.f32 0.5, %v1574_v3  ;;  %1587 = vtanh.f32 %v1068_v4  ;;  %v1108_v12 = vadd.f32 0.5, %v1092_v29  ;;  %v1171_v42 = vmul.f32 %v1143_v27, %v1107_v0 }
 0x274   : > { %v1576_v7 = vpop.eup %1575  ;;  %v1195_v57 = vadd.f32 %v1194_v51, %v1170_v35 }
 0x275   : > { %v1094_v8 = vmul.f32 0.5, %v1576_v7  ;;  %v1109_v26 = vadd.f32 0.5, %v1093_v6  ;;  %v1172_v54 = vmul.f32 %v1143_v27, %v1108_v12  ;;  %v1183_v44 = vadd.f32 %v1182_v49, %v1171_v42 }
 0x276   : > { %v1578_v25 = vpop.eup %1577  ;;  %v1214_v6 = vshrl.u32 %v1213_v30, 7  ;;  %v1653_v27 = vmov 1966171168  }
 0x277   : > { %v1095_v14 = vmul.f32 0.5, %v1578_v25  ;;  %v1110_v53 = vadd.f32 0.5, %v1094_v8  ;;  %v1173_v37 = vmul.f32 %v1148_v16, %v1109_v26  ;;  %v1196_v60 = vadd.f32 %v1195_v57, %v1172_v54  ;;  %v1211_v25 = vpop.permute.xlu0 %1210 }
 0x278   : > { %v1580_v15 = vpop.eup %1579  ;;  %v1215_v0 = vsub.s32 0, %v1214_v6  ;;  %v1225_v10 = vunpack.c.l.s4 %v1653_v27 }
 0x279   : > { %v1111_v24 = vadd.f32 0.5, %v1095_v14  ;;  %v1096_v18 = vmul.f32 0.5, %v1580_v15  ;;  %v1174_v45 = vmul.f32 %v1148_v16, %v1110_v53  ;;  %v1184_v36 = vadd.f32 %v1183_v44, %v1173_v37 }
 0x27a   : > { %v1582_v40 = vpop.eup %1581  ;;  %v1216_v26 = vrot.slane %v1211_v25, %v1215_v0  ;;  %v1226_v15 = vunpack.c.0.s8 %v1225_v10 }
 0x27b   : > { %v1112_v47 = vadd.f32 0.5, %v1096_v18  ;;  %v1097_v48 = vmul.f32 0.5, %v1582_v40  ;;  %v1175_v43 = vmul.f32 %v1153_v56, %v1111_v24  ;;  %v1197_v62 = vadd.f32 %v1196_v60, %v1174_v45 }
 0x27c   : > { %v1584_v46 = vpop.eup %1583  ;;  %v1229_v42 = vsub.s32 %v1226_v15, %v1214_v6 }
 0x27d   : > { %v1113_v59 = vadd.f32 0.5, %v1097_v48  ;;  %v1098_v41 = vmul.f32 0.5, %v1584_v46  ;;  %v1176_v50 = vmul.f32 %v1153_v56, %v1112_v47  ;;  %v1185_v32 = vadd.f32 %v1184_v36, %v1175_v43 }
 0x27e   : > { %v1586_v52 = vpop.eup %1585 }
 0x27f   : > { %v1177_v61 = vmul.f32 %v1158_v39, %v1113_v59  ;;  %v1114_v33 = vadd.f32 0.5, %v1098_v41  ;;  %v1099_v34 = vmul.f32 0.5, %v1586_v52  ;;  %v1198_v31 = vadd.f32 %v1197_v62, %v1176_v50 }
 0x280   : > { %v1588_v58 = vpop.eup %1587 }
 0x281   : > { %v1178_v55 = vmul.f32 %v1158_v39, %v1114_v33  ;;  %v1115_v38 = vadd.f32 0.5, %v1099_v34  ;;  %v1100_v20 = vmul.f32 0.5, %v1588_v58  ;;  %v1186_v2 = vadd.f32 %v1185_v32, %v1177_v61 }
 0x283   : > { %v1179_v21 = vmul.f32 %v1163_v63, %v1115_v38  ;;  %v1116_v3 = vadd.f32 0.5, %v1100_v20  ;;  %v1199_v4 = vadd.f32 %v1198_v31, %v1178_v55 }
 0x285   : > { %v1187_v22 = vadd.f32 %v1186_v2, %v1179_v21  ;;  %v1180_v19 = vmul.f32 %v1163_v63, %v1116_v3 }
 0x287   : > { %v1188_v5 = vrot.slane %v1187_v22, 4  ;;  %v1200_v29 = vadd.f32 %v1199_v4, %v1180_v19 }
 0x289   : > { %v1189_v7 = vadd.f32 %v1188_v5, %v1187_v22  ;;  %v1201_v23 = vrot.slane %v1200_v29, 4 }
 0x28b   : > { %v1190_v1 = vrot.slane %v1189_v7, 2  ;;  %v1202_v28 = vadd.f32 %v1201_v23, %v1200_v29 }
 0x28d   : > { %v1191_v8 = vadd.f32 %v1190_v1, %v1189_v7  ;;  %v1203_v9 = vrot.slane %v1202_v28, 2 }
 0x28f   : > { %v1192_v11 = vrot.slane %v1191_v8, 1  ;;  %v1204_v12 = vadd.f32 %v1203_v9, %v1202_v28 }
 0x291   : > { %v1193_v13 = vadd.f32 %v1192_v11, %v1191_v8  ;;  %v1205_v14 = vrot.slane %v1204_v12, 1 }
 0x293   : > { %v1217_v16 = vadd.f32 %v1216_v26, %v1193_v13  ;;  %v1206_v17 = vadd.f32 %v1205_v14, %v1204_v12 }
 0x295   : > { %v1218_v35 = vadd.f32 %v1216_v26, %v1206_v17  ;;  %v1219_v53 = vmax.f32 %v1217_v16, 0.0 }
 0x297   : > { %v1220_v24 = vmax.f32 %v1218_v35, 0.0 }
 0x299   : > { %v1223_v18 = vcombine.low %v1219_v53, %v1220_v24 }
 0x29b   : > { %v1230_v40 = vrot.slane %v1223_v18, %v1229_v42  ;;  %1251 = sbr.rel (!%p1736_p5) target bundleno = 698 (0x2ba), region = 52 }
 0x29d   : > { %v1237_v51 = vrot.slane %v1230_v40, %v1229_v42 }
 0x29f   : > { %1243 = vst.msk [vmem:[%s286_s25] sm:$0x3] %vm1241_vm1, %v1237_v51 }
 0x2a0   : > { %s2161_s15 = smov (!%p1254_p11, %s1253_s15), 2 }
 0x2a1   : > { %s2104_s16 = sshll.u32 %s2161_s15, 4 }
 0x2a2   : > { %s1258_s17 = ssub.s32 32, %s2104_s16 }
 0x2a3   : > { %1259 = vsyncadd %s2099_s30, %s1258_s17  ;;  %p1381_p12 = scmp.ne.s32.totalorder %s2104_s16, 0  ;;  %s1262_s12 = scalar_lea.hbm %s2153_s7, %s1747_s14 }
 0x2a4   : > { %s1264_s20 = sshll.u32 %s286_s25, 4  ;;  %s1654_s21 = smov [#allocation3]   ;;  %s1265_s20 = int_to_ptr.vmem [resolvable:$true] %s1264_s20 }
 0x2a5   : > { %s1589_s6 = scalar_lea.vmem %s1265_s20, %s2104_s16  ;;  %s1593_s22 = sshll.u32 %s1654_s21, 4  ;;  %s1594_s22 = int_to_ptr.vmem [resolvable:$false] %s1593_s22 }
 0x2a6   : > { %p1590_p13 = scmp.ne.s32.totalorder %s1265_s20, %s1589_s6  ;;  %s1595_s23 = scalar_lea.vmem %s1594_s22, 64 }
 0x2a7   : > { %p1596_p2 = scmp.lt.s32.totalorder %s1265_s20, %s1594_s22  ;;  %p1597_p3 = scmp.lt.s32.totalorder %s1595_s23, %s1589_s6 }
 0x2a8   : > { %p1591_p0 = pnand %p1590_p13, %p1381_p12 }
 0x2a9   : > { %p1598_p4 = por %p1597_p3, %p1596_p2 }
 0x2aa   : > { %p1592_p1 = pneg %p1591_p0 }
 0x2ac   : > { %p1599_p5 = pnand %p1598_p4, %p1592_p1 }
 0x2ae   : > { %1602 = shalt.err (!%p1599_p5)
}
 0x2af   : > { %s1603_s9 = scalar_lea.hbm %s1262_s12, %s2104_s16  ;;  %s1607_s25 = scalar_lea.hbm %s2153_s7, 48 }
 0x2b0   : > { %p1604_p7 = scmp.ne.s32.totalorder %s1262_s12, %s1603_s9  ;;  %p1608_p10 = scmp.lt.s32.totalorder %s1262_s12, %s2153_s7 }
 0x2b1   : > { %p1609_p11 = scmp.lt.s32.totalorder %s1607_s25, %s1603_s9 }
 0x2b2   : > { %p1605_p8 = pnand %p1604_p7, %p1381_p12 }
 0x2b3   : > { %p1610_p13 = por %p1609_p11, %p1608_p10 }
 0x2b4   : > { %p1606_p9 = pneg %p1605_p8 }
 0x2b6   : > { %p1611_p0 = pnand %p1610_p13, %p1606_p9 }
 0x2b8   : > { %1614 = shalt.err (!%p1611_p0)
}
 0x2b9   : > { %1267 = dma.vmem_to_hbm [thread:$0]  (%p1381_p12), %s1265_s20, %s2104_s16, %s1262_s12, %s2099_s30  }
 0x2ba PF: > { %p1455_p1 = scmp.ge.s32.totalorder %s1649_s29, 2  ;;  %s1276_s17 = sand.u32 1, %s1637_s26  }
 0x2bb   : > { %s1277_s18 = scalar_lea.sflag [#allocation4], %s1276_s17 }
 0x2bc   : > { %p1452_p2 = pnand %p1455_p1, %p1740_p6 }
 0x2be   : > { %p1453_p3 = pneg %p1452_p2 }
 0x2c0   : > { %1632 = dma.done.wait (%p1453_p3), %s1277_s18, 32  }
 0x2c1   : > { %1634 = vsyncadd (%p1453_p3), %s1277_s18, 4294967264  ;;  %p19_p4 = scmp.ge.s32.totalorder %s1723_s8, 4   ;;  %s2156_s26 = smov %s1641_s27 }
 0x2c2   : > { %s2157_s27 = smov %s1645_s28  ;;  %s2158_s28 = smov %s1734_s11 }
 0x2c3   : > { %s2159_s29 = smov %s1723_s8  ;;  %21 = sbr.rel (!%p19_p4) target bundleno = 6 (0x6), region = 83 }
 0x2c8   :  { %1282 = vsyncpa [#allocation4], 1 }
 0x2c9   :  { %1284 = vsyncpa [#allocation4 + $0x1], 1 }

</bundles_post_ra>
